<compile_context>
chip_gen: v7x
topology: tpu7x:2x2x1
jax: 0.10.0
libtpu: 0.0.40
codegen_flags: <defaults>
</compile_context>

<pallas_src>
import functools

import jax
import jax.numpy as jnp
from jax import lax
from jax.experimental import pallas as pl
from jax.experimental.pallas import tpu as pltpu


def _pick_q_tile(T):
    """Largest MXU-friendly q tile that divides T; fall back to full T."""
    for tq in (256, 128):
        if T % tq == 0:
            return tq
    return T  # small / odd T: single tile (block equals full dim -> legal)


def _mha_kernel(xq_ref, xkv_ref, wq_ref, wkv_ref, wproj_ref, bp_ref, o_ref,
                *, n_heads, d_head, tq):
    xq = xq_ref[0].astype(jnp.bfloat16)      # (tq, C)  current q tile of x
    xkv = xkv_ref[0].astype(jnp.bfloat16)    # (T,  C)  full sequence for K/V
    T = xkv.shape[0]
    C = xq.shape[1]
    hd = n_heads * d_head

    # Fused, lane-dense MXU projections (bf16 operands, f32 accumulation).
    # Scale 1/sqrt(d_head) is already folded into wq_ref by the wrapper.
    q_all = jnp.dot(xq, wq_ref[...], preferred_element_type=jnp.float32)    # (tq, H*d)
    kv_all = jnp.dot(xkv, wkv_ref[...], preferred_element_type=jnp.float32)  # (T, 2*H*d)

    # Causal mask for this q tile (global row offset from the grid position).
    q_start = pl.program_id(1) * tq
    row = q_start + lax.broadcasted_iota(jnp.int32, (tq, T), 0)
    col = lax.broadcasted_iota(jnp.int32, (tq, T), 1)
    causal = col <= row

    # Accumulate the output projection head-by-head into one (tq, C) f32 value
    # (no concat, no H live head outputs).
    out = jnp.zeros((tq, C), jnp.float32)

    for h in range(n_heads):                               # static unroll; H is small
        lo = h * d_head
        q = q_all[:, lo:lo + d_head].astype(jnp.bfloat16)                  # (tq, d)
        k = kv_all[:, lo:lo + d_head].astype(jnp.bfloat16)                 # (T,  d)
        v = kv_all[:, hd + lo:hd + lo + d_head].astype(jnp.bfloat16)       # (T,  d)

        # q @ k^T without materializing a transpose.
        s = lax.dot_general(q, k, (((1,), (1,)), ((), ())),
                            preferred_element_type=jnp.float32)            # (tq, T)
        # -inf is safe: the causal diagonal is always unmasked -> finite row max.
        s = jnp.where(causal, s, -jnp.inf)

        m = jnp.max(s, axis=-1, keepdims=True)                             # f32 stats
        e = jnp.exp(s - m)
        denom = jnp.sum(e, axis=-1, keepdims=True)

        # Deferred normalization: scale the (tq, d) result, not the (tq, T) probs.
        acc = jnp.dot(e.astype(jnp.bfloat16), v,
                      preferred_element_type=jnp.float32)                  # (tq, d)
        acc = acc * pl.reciprocal(denom, approx=True)                      # EUP slot

        # TODO(synk): dropout on the attention probabilities is identity
        # (dropout_freq = 0.0 / eval semantics).
        out = out + jnp.dot(acc.astype(jnp.bfloat16),
                            wproj_ref[lo:lo + d_head, :],
                            preferred_element_type=jnp.float32)            # (tq, C)

    o_ref[0] = (out + bp_ref[...]).astype(o_ref.dtype)


def prepare_mha_params(wq, wk, wv, wp, bp, compute_dtype=jnp.bfloat16):
    """One-time weight preprocessing (do NOT re-run per forward call).

    wq/wk/wv: [H, C, d_head]  per-head projection weights
    wp:       [H, d_head, C]  per-head rows of the output projection
    bp:       [1, C]          output projection bias
    """
    H, C, d_head = wq.shape
    hd = H * d_head
    scale = float(d_head) ** -0.5

    def head_major(w):  # (H, C, d) -> (C, H*d): column h*d+j <- w[h][:, j]
        return jnp.transpose(w, (1, 0, 2)).reshape(C, hd)

    w_q = (head_major(wq) * scale).astype(compute_dtype)        # scale folded into Q
    w_kv = jnp.concatenate([head_major(wk), head_major(wv)],
                           axis=-1).astype(compute_dtype)       # (C, 2*H*d)
    w_proj = wp.reshape(hd, C).astype(compute_dtype)            # (H*d, C)
    return w_q, w_kv, w_proj, bp.astype(jnp.float32)


def multi_head_attention(x, w_q, w_kv, w_proj, bp, *, n_heads, d_head):
    """x: [B, T, C] (any float dtype); prepared params from prepare_mha_params."""
    B, T, C = x.shape
    hd = n_heads * d_head
    tq = _pick_q_tile(T)
    n_qt = T // tq

    x_bf = x.astype(jnp.bfloat16)   # halve HBM traffic; MXU-ready operand

    kernel = functools.partial(_mha_kernel, n_heads=n_heads, d_head=d_head, tq=tq)

    flops = B * (2 * T * C * hd                      # Q projection
                 + n_qt * 2 * T * C * 2 * hd         # K/V projection (per q tile)
                 + n_heads * 2 * (2 * T * T * d_head)  # QK^T and P@V
                 + 2 * T * hd * C)                   # output projection
    cost = pl.CostEstimate(
        flops=flops,
        transcendentals=B * n_heads * T * T,
        bytes_accessed=(2 * (1 + n_qt) * B * T * C           # bf16 x (q tile + kv view)
                        + 2 * (3 * hd * C + hd * C)          # bf16 weights
                        + 4 * (B * T * C + C)),              # f32 out + bias
    )

    grid_spec = pltpu.PrefetchScalarGridSpec(
        num_scalar_prefetch=0,
        grid=(B, n_qt),
        in_specs=[
            pl.BlockSpec((1, tq, C), lambda b, qi: (b, qi, 0)),   # x: q tile
            pl.BlockSpec((1, T, C), lambda b, qi: (b, 0, 0)),     # x: full seq for K/V
            pl.BlockSpec((C, hd), lambda b, qi: (0, 0)),          # Wq (scale folded, resident)
            pl.BlockSpec((C, 2 * hd), lambda b, qi: (0, 0)),      # Wk|Wv (resident)
            pl.BlockSpec((hd, C), lambda b, qi: (0, 0)),          # Wproj (resident)
            pl.BlockSpec((1, C), lambda b, qi: (0, 0)),           # bias (resident)
        ],
        out_specs=pl.BlockSpec((1, tq, C), lambda b, qi: (b, qi, 0)),
    )

    return pl.pallas_call(
        kernel,
        out_shape=jax.ShapeDtypeStruct((B, T, C), jnp.float32),
        grid_spec=grid_spec,
        compiler_params=pltpu.CompilerParams(
            dimension_semantics=("parallel", "parallel"),
            vmem_limit_bytes=48 * 1024 * 1024,   # above v5e's 16 MiB default, < v7x physical
        ),
        cost_estimate=cost,
    )(x_bf, x_bf, w_q, w_kv, w_proj, bp)


def reference(x, wq, wk, wv, wp, bp):
    """Pure-JAX f32 reference mirroring the PyTorch forward."""
    B, T, C = x.shape
    H, _, d_head = wq.shape
    outs = []
    for h in range(H):
        q = x @ wq[h]
        k = x @ wk[h]
        v = x @ wv[h]
        s = q @ jnp.swapaxes(k, -2, -1) * (d_head ** -0.5)
        mask = jnp.tril(jnp.ones((T, T), dtype=bool))
        s = jnp.where(mask, s, -jnp.inf)
        p = jax.nn.softmax(s, axis=-1)
        outs.append(p @ v)
    concat = jnp.concatenate(outs, axis=-1)                       # (B, T, H*d_head)
    w_proj = jnp.concatenate([wp[h] for h in range(H)], axis=0)   # (H*d_head, C)
    return concat @ w_proj + bp[0]


if __name__ == "__main__":
    B, T, C, n_heads = 2, 8, 32, 4
    d_head = C // n_heads
    max_block_size = 16  # only the top-left T x T of tril is used

    key = jax.random.PRNGKey(0)
    kx, kq, kk, kv, kpw, kpb = jax.random.split(key, 6)

    x = jax.random.normal(kx, (B, T, C), dtype=jnp.float32)

    # PyTorch nn.Linear default init: U(-1/sqrt(fan_in), 1/sqrt(fan_in))
    lim_head = 1.0 / (C ** 0.5)
    wq = jax.random.uniform(kq, (n_heads, C, d_head), jnp.float32, -lim_head, lim_head)
    wk = jax.random.uniform(kk, (n_heads, C, d_head), jnp.float32, -lim_head, lim_head)
    wv = jax.random.uniform(kv, (n_heads, C, d_head), jnp.float32, -lim_head, lim_head)

    lim_proj = 1.0 / ((d_head * n_heads) ** 0.5)
    # wp[h] = rows [h*d_head:(h+1)*d_head) of the (H*d_head, C) projection matrix.
    wp = jax.random.uniform(kpw, (n_heads, d_head, C), jnp.float32, -lim_proj, lim_proj)
    bp = jax.random.uniform(kpb, (1, C), jnp.float32, -lim_proj, lim_proj)

    # One-time weight preprocessing (outside the per-call path).
    w_q, w_kv, w_proj, bp_f32 = prepare_mha_params(wq, wk, wv, wp, bp)

    out = multi_head_attention(x, w_q, w_kv, w_proj, bp_f32,
                               n_heads=n_heads, d_head=d_head)
    out = jax.block_until_ready(out)

    ref = reference(x, wq, wk, wv, wp, bp)
    assert out.shape == (B, T, C)
    # Tolerance accounts for bf16 MXU operands (f32 accumulation) and the EUP
    # approximate reciprocal; any structural error would be orders larger.
    assert jnp.allclose(out, ref, atol=3e-2, rtol=3e-2), "mismatch vs reference"

    print("KERNEL_OK")
</pallas_src>

<mosaic_0001>
module attributes {stable_mosaic.version = 11 : i64} {
  func.func @_mha_kernel(%arg0: i32, %arg1: i32, %arg2: memref<1x8x32xbf16, #tpu.memory_space<vmem>>, %arg3: memref<1x8x32xbf16, #tpu.memory_space<vmem>>, %arg4: memref<32x32xbf16, #tpu.memory_space<vmem>>, %arg5: memref<32x64xbf16, #tpu.memory_space<vmem>>, %arg6: memref<32x32xbf16, #tpu.memory_space<vmem>>, %arg7: memref<1x32xf32, #tpu.memory_space<vmem>>, %arg8: memref<1x8x32xf32, #tpu.memory_space<vmem>>) attributes {dimension_semantics = [#tpu.dimension_semantics<parallel>, #tpu.dimension_semantics<parallel>], iteration_bounds = array<i64: 2, 1>, scalar_prefetch = 0 : i64, scratch_operands = 0 : i64, tpu.core_type = #tpu.core_type<tc>, window_params = [{transform_indices = @transform_0, window_bounds = array<i64: 1, 8, 32>}, {transform_indices = @transform_1, window_bounds = array<i64: 1, 8, 32>}, {pipeline_mode = #tpu.pipeline_mode<synchronous>, transform_indices = @transform_2, window_bounds = array<i64: 32, 32>}, {pipeline_mode = #tpu.pipeline_mode<synchronous>, transform_indices = @transform_3, window_bounds = array<i64: 32, 64>}, {pipeline_mode = #tpu.pipeline_mode<synchronous>, transform_indices = @transform_4, window_bounds = array<i64: 32, 32>}, {pipeline_mode = #tpu.pipeline_mode<synchronous>, transform_indices = @transform_5, window_bounds = array<i64: 1, 32>}, {transform_indices = @transform_6, window_bounds = array<i64: 1, 8, 32>}]} {
    %c0 = arith.constant 0 : index
    %c0_0 = arith.constant 0 : index
    %c0_1 = arith.constant 0 : index
    %0 = vector.load %arg2[%c0, %c0_0, %c0_1] : memref<1x8x32xbf16, #tpu.memory_space<vmem>>, vector<1x8x32xbf16>
    %1 = vector.shape_cast %0 : vector<1x8x32xbf16> to vector<8x32xbf16>
    %c0_2 = arith.constant 0 : index
    %c0_3 = arith.constant 0 : index
    %c0_4 = arith.constant 0 : index
    %2 = vector.load %arg3[%c0_2, %c0_3, %c0_4] : memref<1x8x32xbf16, #tpu.memory_space<vmem>>, vector<1x8x32xbf16>
    %3 = vector.shape_cast %2 : vector<1x8x32xbf16> to vector<8x32xbf16>
    %c0_5 = arith.constant 0 : index
    %c0_6 = arith.constant 0 : index
    %4 = vector.load %arg4[%c0_5, %c0_6] : memref<32x32xbf16, #tpu.memory_space<vmem>>, vector<32x32xbf16>
    %cst = arith.constant dense<0.000000e+00> : vector<8x32xf32>
    %5 = tpu.matmul %1, %4, %cst {dimension_numbers = #tpu.dot_dimension_numbers<[1], [0], [0], [1], [0, 0, 1, 1], [], []>} : vector<8x32xbf16>, vector<32x32xbf16>, vector<8x32xf32> -> vector<8x32xf32>
    %c0_7 = arith.constant 0 : index
    %c0_8 = arith.constant 0 : index
    %6 = vector.load %arg5[%c0_7, %c0_8] : memref<32x64xbf16, #tpu.memory_space<vmem>>, vector<32x64xbf16>
    %cst_9 = arith.constant dense<0.000000e+00> : vector<8x64xf32>
    %7 = tpu.matmul %3, %6, %cst_9 {dimension_numbers = #tpu.dot_dimension_numbers<[1], [0], [0], [1], [0, 0, 1, 1], [], []>} : vector<8x32xbf16>, vector<32x64xbf16>, vector<8x64xf32> -> vector<8x64xf32>
    %c8_i32 = arith.constant 8 : i32
    %8 = arith.muli %arg1, %c8_i32 : i32
    %9 = tpu.iota {dimensions = array<i32: 0>} : vector<8x8xi32>
    %10 = vector.broadcast %8 : i32 to vector<8x8xi32>
    %11 = arith.addi %10, %9 : vector<8x8xi32>
    %12 = tpu.iota {dimensions = array<i32: 1>} : vector<8x8xi32>
    %13 = arith.cmpi sle, %12, %11 : vector<8x8xi32>
    %cst_10 = arith.constant 0.000000e+00 : f32
    %14 = vector.broadcast %cst_10 : f32 to vector<8x32xf32>
    %15 = vector.extract_strided_slice %5 {offsets = [0, 0], sizes = [8, 8], strides = [1, 1]} : vector<8x32xf32> to vector<8x8xf32>
    %16 = arith.truncf %15 : vector<8x8xf32> to vector<8x8xbf16>
    %17 = vector.extract_strided_slice %7 {offsets = [0, 0], sizes = [8, 8], strides = [1, 1]} : vector<8x64xf32> to vector<8x8xf32>
    %18 = arith.truncf %17 : vector<8x8xf32> to vector<8x8xbf16>
    %19 = vector.extract_strided_slice %7 {offsets = [0, 32], sizes = [8, 8], strides = [1, 1]} : vector<8x64xf32> to vector<8x8xf32>
    %20 = arith.truncf %19 : vector<8x8xf32> to vector<8x8xbf16>
    %cst_11 = arith.constant dense<0.000000e+00> : vector<8x8xf32>
    %21 = tpu.matmul %16, %18, %cst_11 {dimension_numbers = #tpu.dot_dimension_numbers<[1], [1], [0], [0], [0, 0, 1, 0], [], []>} : vector<8x8xbf16>, vector<8x8xbf16>, vector<8x8xf32> -> vector<8x8xf32>
    %cst_12 = arith.constant 0xFF800000 : f32
    %22 = vector.broadcast %cst_12 : f32 to vector<8x8xf32>
    %23 = arith.select %13, %21, %22 : vector<8x8xi1>, vector<8x8xf32>
    %cst_13 = arith.constant dense<0xFF800000> : vector<8xf32>
    %24 = vector.multi_reduction <maximumf>, %23, %cst_13 [1] : vector<8x8xf32> to vector<8xf32>
    %25 = vector.shape_cast %24 : vector<8xf32> to vector<8x1xf32>
    %26 = vector.broadcast %25 : vector<8x1xf32> to vector<8x8xf32>
    %27 = arith.subf %23, %26 : vector<8x8xf32>
    %28 = math.exp %27 : vector<8x8xf32>
    %cst_14 = arith.constant dense<0.000000e+00> : vector<8xf32>
    %29 = vector.multi_reduction <add>, %28, %cst_14 [1] : vector<8x8xf32> to vector<8xf32>
    %30 = vector.shape_cast %29 : vector<8xf32> to vector<8x1xf32>
    %31 = arith.truncf %28 : vector<8x8xf32> to vector<8x8xbf16>
    %cst_15 = arith.constant dense<0.000000e+00> : vector<8x8xf32>
    %32 = tpu.matmul %31, %20, %cst_15 {dimension_numbers = #tpu.dot_dimension_numbers<[1], [0], [0], [1], [0, 0, 1, 1], [], []>} : vector<8x8xbf16>, vector<8x8xbf16>, vector<8x8xf32> -> vector<8x8xf32>
    %33 = tpu.reciprocal %30 {approx = true} : vector<8x1xf32> -> vector<8x1xf32>
    %34 = vector.broadcast %33 : vector<8x1xf32> to vector<8x8xf32>
    %35 = arith.mulf %32, %34 : vector<8x8xf32>
    %36 = arith.truncf %35 : vector<8x8xf32> to vector<8x8xbf16>
    %c0_16 = arith.constant 0 : index
    %c0_17 = arith.constant 0 : index
    %37 = vector.load %arg6[%c0_16, %c0_17] : memref<32x32xbf16, #tpu.memory_space<vmem>>, vector<8x32xbf16>
    %cst_18 = arith.constant dense<0.000000e+00> : vector<8x32xf32>
    %38 = tpu.matmul %36, %37, %cst_18 {dimension_numbers = #tpu.dot_dimension_numbers<[1], [0], [0], [1], [0, 0, 1, 1], [], []>} : vector<8x8xbf16>, vector<8x32xbf16>, vector<8x32xf32> -> vector<8x32xf32>
    %39 = arith.addf %14, %38 : vector<8x32xf32>
    %40 = vector.extract_strided_slice %5 {offsets = [0, 8], sizes = [8, 8], strides = [1, 1]} : vector<8x32xf32> to vector<8x8xf32>
    %41 = arith.truncf %40 : vector<8x8xf32> to vector<8x8xbf16>
    %42 = vector.extract_strided_slice %7 {offsets = [0, 8], sizes = [8, 8], strides = [1, 1]} : vector<8x64xf32> to vector<8x8xf32>
    %43 = arith.truncf %42 : vector<8x8xf32> to vector<8x8xbf16>
    %44 = vector.extract_strided_slice %7 {offsets = [0, 40], sizes = [8, 8], strides = [1, 1]} : vector<8x64xf32> to vector<8x8xf32>
    %45 = arith.truncf %44 : vector<8x8xf32> to vector<8x8xbf16>
    %cst_19 = arith.constant dense<0.000000e+00> : vector<8x8xf32>
    %46 = tpu.matmul %41, %43, %cst_19 {dimension_numbers = #tpu.dot_dimension_numbers<[1], [1], [0], [0], [0, 0, 1, 0], [], []>} : vector<8x8xbf16>, vector<8x8xbf16>, vector<8x8xf32> -> vector<8x8xf32>
    %cst_20 = arith.constant 0xFF800000 : f32
    %47 = vector.broadcast %cst_20 : f32 to vector<8x8xf32>
    %48 = arith.select %13, %46, %47 : vector<8x8xi1>, vector<8x8xf32>
    %cst_21 = arith.constant dense<0xFF800000> : vector<8xf32>
    %49 = vector.multi_reduction <maximumf>, %48, %cst_21 [1] : vector<8x8xf32> to vector<8xf32>
    %50 = vector.shape_cast %49 : vector<8xf32> to vector<8x1xf32>
    %51 = vector.broadcast %50 : vector<8x1xf32> to vector<8x8xf32>
    %52 = arith.subf %48, %51 : vector<8x8xf32>
    %53 = math.exp %52 : vector<8x8xf32>
    %cst_22 = arith.constant dense<0.000000e+00> : vector<8xf32>
    %54 = vector.multi_reduction <add>, %53, %cst_22 [1] : vector<8x8xf32> to vector<8xf32>
    %55 = vector.shape_cast %54 : vector<8xf32> to vector<8x1xf32>
    %56 = arith.truncf %53 : vector<8x8xf32> to vector<8x8xbf16>
    %cst_23 = arith.constant dense<0.000000e+00> : vector<8x8xf32>
    %57 = tpu.matmul %56, %45, %cst_23 {dimension_numbers = #tpu.dot_dimension_numbers<[1], [0], [0], [1], [0, 0, 1, 1], [], []>} : vector<8x8xbf16>, vector<8x8xbf16>, vector<8x8xf32> -> vector<8x8xf32>
    %58 = tpu.reciprocal %55 {approx = true} : vector<8x1xf32> -> vector<8x1xf32>
    %59 = vector.broadcast %58 : vector<8x1xf32> to vector<8x8xf32>
    %60 = arith.mulf %57, %59 : vector<8x8xf32>
    %61 = arith.truncf %60 : vector<8x8xf32> to vector<8x8xbf16>
    %c8 = arith.constant 8 : index
    %c0_24 = arith.constant 0 : index
    %62 = vector.load %arg6[%c8, %c0_24] : memref<32x32xbf16, #tpu.memory_space<vmem>>, vector<8x32xbf16>
    %cst_25 = arith.constant dense<0.000000e+00> : vector<8x32xf32>
    %63 = tpu.matmul %61, %62, %cst_25 {dimension_numbers = #tpu.dot_dimension_numbers<[1], [0], [0], [1], [0, 0, 1, 1], [], []>} : vector<8x8xbf16>, vector<8x32xbf16>, vector<8x32xf32> -> vector<8x32xf32>
    %64 = arith.addf %39, %63 : vector<8x32xf32>
    %65 = vector.extract_strided_slice %5 {offsets = [0, 16], sizes = [8, 8], strides = [1, 1]} : vector<8x32xf32> to vector<8x8xf32>
    %66 = arith.truncf %65 : vector<8x8xf32> to vector<8x8xbf16>
    %67 = vector.extract_strided_slice %7 {offsets = [0, 16], sizes = [8, 8], strides = [1, 1]} : vector<8x64xf32> to vector<8x8xf32>
    %68 = arith.truncf %67 : vector<8x8xf32> to vector<8x8xbf16>
    %69 = vector.extract_strided_slice %7 {offsets = [0, 48], sizes = [8, 8], strides = [1, 1]} : vector<8x64xf32> to vector<8x8xf32>
    %70 = arith.truncf %69 : vector<8x8xf32> to vector<8x8xbf16>
    %cst_26 = arith.constant dense<0.000000e+00> : vector<8x8xf32>
    %71 = tpu.matmul %66, %68, %cst_26 {dimension_numbers = #tpu.dot_dimension_numbers<[1], [1], [0], [0], [0, 0, 1, 0], [], []>} : vector<8x8xbf16>, vector<8x8xbf16>, vector<8x8xf32> -> vector<8x8xf32>
    %cst_27 = arith.constant 0xFF800000 : f32
    %72 = vector.broadcast %cst_27 : f32 to vector<8x8xf32>
    %73 = arith.select %13, %71, %72 : vector<8x8xi1>, vector<8x8xf32>
    %cst_28 = arith.constant dense<0xFF800000> : vector<8xf32>
    %74 = vector.multi_reduction <maximumf>, %73, %cst_28 [1] : vector<8x8xf32> to vector<8xf32>
    %75 = vector.shape_cast %74 : vector<8xf32> to vector<8x1xf32>
    %76 = vector.broadcast %75 : vector<8x1xf32> to vector<8x8xf32>
    %77 = arith.subf %73, %76 : vector<8x8xf32>
    %78 = math.exp %77 : vector<8x8xf32>
    %cst_29 = arith.constant dense<0.000000e+00> : vector<8xf32>
    %79 = vector.multi_reduction <add>, %78, %cst_29 [1] : vector<8x8xf32> to vector<8xf32>
    %80 = vector.shape_cast %79 : vector<8xf32> to vector<8x1xf32>
    %81 = arith.truncf %78 : vector<8x8xf32> to vector<8x8xbf16>
    %cst_30 = arith.constant dense<0.000000e+00> : vector<8x8xf32>
    %82 = tpu.matmul %81, %70, %cst_30 {dimension_numbers = #tpu.dot_dimension_numbers<[1], [0], [0], [1], [0, 0, 1, 1], [], []>} : vector<8x8xbf16>, vector<8x8xbf16>, vector<8x8xf32> -> vector<8x8xf32>
    %83 = tpu.reciprocal %80 {approx = true} : vector<8x1xf32> -> vector<8x1xf32>
    %84 = vector.broadcast %83 : vector<8x1xf32> to vector<8x8xf32>
    %85 = arith.mulf %82, %84 : vector<8x8xf32>
    %86 = arith.truncf %85 : vector<8x8xf32> to vector<8x8xbf16>
    %c16 = arith.constant 16 : index
    %c0_31 = arith.constant 0 : index
    %87 = vector.load %arg6[%c16, %c0_31] : memref<32x32xbf16, #tpu.memory_space<vmem>>, vector<8x32xbf16>
    %cst_32 = arith.constant dense<0.000000e+00> : vector<8x32xf32>
    %88 = tpu.matmul %86, %87, %cst_32 {dimension_numbers = #tpu.dot_dimension_numbers<[1], [0], [0], [1], [0, 0, 1, 1], [], []>} : vector<8x8xbf16>, vector<8x32xbf16>, vector<8x32xf32> -> vector<8x32xf32>
    %89 = arith.addf %64, %88 : vector<8x32xf32>
    %90 = vector.extract_strided_slice %5 {offsets = [0, 24], sizes = [8, 8], strides = [1, 1]} : vector<8x32xf32> to vector<8x8xf32>
    %91 = arith.truncf %90 : vector<8x8xf32> to vector<8x8xbf16>
    %92 = vector.extract_strided_slice %7 {offsets = [0, 24], sizes = [8, 8], strides = [1, 1]} : vector<8x64xf32> to vector<8x8xf32>
    %93 = arith.truncf %92 : vector<8x8xf32> to vector<8x8xbf16>
    %94 = vector.extract_strided_slice %7 {offsets = [0, 56], sizes = [8, 8], strides = [1, 1]} : vector<8x64xf32> to vector<8x8xf32>
    %95 = arith.truncf %94 : vector<8x8xf32> to vector<8x8xbf16>
    %cst_33 = arith.constant dense<0.000000e+00> : vector<8x8xf32>
    %96 = tpu.matmul %91, %93, %cst_33 {dimension_numbers = #tpu.dot_dimension_numbers<[1], [1], [0], [0], [0, 0, 1, 0], [], []>} : vector<8x8xbf16>, vector<8x8xbf16>, vector<8x8xf32> -> vector<8x8xf32>
    %cst_34 = arith.constant 0xFF800000 : f32
    %97 = vector.broadcast %cst_34 : f32 to vector<8x8xf32>
    %98 = arith.select %13, %96, %97 : vector<8x8xi1>, vector<8x8xf32>
    %cst_35 = arith.constant dense<0xFF800000> : vector<8xf32>
    %99 = vector.multi_reduction <maximumf>, %98, %cst_35 [1] : vector<8x8xf32> to vector<8xf32>
    %100 = vector.shape_cast %99 : vector<8xf32> to vector<8x1xf32>
    %101 = vector.broadcast %100 : vector<8x1xf32> to vector<8x8xf32>
    %102 = arith.subf %98, %101 : vector<8x8xf32>
    %103 = math.exp %102 : vector<8x8xf32>
    %cst_36 = arith.constant dense<0.000000e+00> : vector<8xf32>
    %104 = vector.multi_reduction <add>, %103, %cst_36 [1] : vector<8x8xf32> to vector<8xf32>
    %105 = vector.shape_cast %104 : vector<8xf32> to vector<8x1xf32>
    %106 = arith.truncf %103 : vector<8x8xf32> to vector<8x8xbf16>
    %cst_37 = arith.constant dense<0.000000e+00> : vector<8x8xf32>
    %107 = tpu.matmul %106, %95, %cst_37 {dimension_numbers = #tpu.dot_dimension_numbers<[1], [0], [0], [1], [0, 0, 1, 1], [], []>} : vector<8x8xbf16>, vector<8x8xbf16>, vector<8x8xf32> -> vector<8x8xf32>
    %108 = tpu.reciprocal %105 {approx = true} : vector<8x1xf32> -> vector<8x1xf32>
    %109 = vector.broadcast %108 : vector<8x1xf32> to vector<8x8xf32>
    %110 = arith.mulf %107, %109 : vector<8x8xf32>
    %111 = arith.truncf %110 : vector<8x8xf32> to vector<8x8xbf16>
    %c24 = arith.constant 24 : index
    %c0_38 = arith.constant 0 : index
    %112 = vector.load %arg6[%c24, %c0_38] : memref<32x32xbf16, #tpu.memory_space<vmem>>, vector<8x32xbf16>
    %cst_39 = arith.constant dense<0.000000e+00> : vector<8x32xf32>
    %113 = tpu.matmul %111, %112, %cst_39 {dimension_numbers = #tpu.dot_dimension_numbers<[1], [0], [0], [1], [0, 0, 1, 1], [], []>} : vector<8x8xbf16>, vector<8x32xbf16>, vector<8x32xf32> -> vector<8x32xf32>
    %114 = arith.addf %89, %113 : vector<8x32xf32>
    %c0_40 = arith.constant 0 : index
    %c0_41 = arith.constant 0 : index
    %115 = vector.load %arg7[%c0_40, %c0_41] : memref<1x32xf32, #tpu.memory_space<vmem>>, vector<1x32xf32>
    %116 = vector.broadcast %115 : vector<1x32xf32> to vector<8x32xf32>
    %117 = arith.addf %114, %116 : vector<8x32xf32>
    %c0_42 = arith.constant 0 : index
    %c0_43 = arith.constant 0 : index
    %c0_44 = arith.constant 0 : index
    %118 = vector.load %arg8[%c0_42, %c0_43, %c0_44] : memref<1x8x32xf32, #tpu.memory_space<vmem>>, vector<1x8x32xf32>
    %119 = vector.shape_cast %118 : vector<1x8x32xf32> to vector<8x32xf32>
    %120 = vector.shape_cast %117 : vector<8x32xf32> to vector<1x8x32xf32>
    tpu.vector_store %arg8[%c0_42, %c0_43, %c0_44], %120 {strides = array<i32>} : memref<1x8x32xf32, #tpu.memory_space<vmem>>, vector<1x8x32xf32>,
    return
  }
  func.func @transform_0(%arg0: i32, %arg1: i32) -> (i32, i32, i32) {
    %c0_i32 = arith.constant 0 : i32
    %c0_i32_0 = arith.constant 0 : i32
    return %arg0, %arg1, %c0_i32 : i32, i32, i32
  }
  func.func @transform_1(%arg0: i32, %arg1: i32) -> (i32, i32, i32) {
    %c0_i32 = arith.constant 0 : i32
    %c0_i32_0 = arith.constant 0 : i32
    %c0_i32_1 = arith.constant 0 : i32
    return %arg0, %c0_i32, %c0_i32_0 : i32, i32, i32
  }
  func.func @transform_2(%arg0: i32, %arg1: i32) -> (i32, i32) {
    %c0_i32 = arith.constant 0 : i32
    %c0_i32_0 = arith.constant 0 : i32
    %c0_i32_1 = arith.constant 0 : i32
    return %c0_i32, %c0_i32_0 : i32, i32
  }
  func.func @transform_3(%arg0: i32, %arg1: i32) -> (i32, i32) {
    %c0_i32 = arith.constant 0 : i32
    %c0_i32_0 = arith.constant 0 : i32
    %c0_i32_1 = arith.constant 0 : i32
    return %c0_i32, %c0_i32_0 : i32, i32
  }
  func.func @transform_4(%arg0: i32, %arg1: i32) -> (i32, i32) {
    %c0_i32 = arith.constant 0 : i32
    %c0_i32_0 = arith.constant 0 : i32
    %c0_i32_1 = arith.constant 0 : i32
    return %c0_i32, %c0_i32_0 : i32, i32
  }
  func.func @transform_5(%arg0: i32, %arg1: i32) -> (i32, i32) {
    %c0_i32 = arith.constant 0 : i32
    %c0_i32_0 = arith.constant 0 : i32
    %c0_i32_1 = arith.constant 0 : i32
    return %c0_i32, %c0_i32_0 : i32, i32
  }
  func.func @transform_6(%arg0: i32, %arg1: i32) -> (i32, i32, i32) {
    %c0_i32 = arith.constant 0 : i32
    %c0_i32_0 = arith.constant 0 : i32
    return %arg0, %arg1, %c0_i32 : i32, i32, i32
  }
}

</mosaic_0001>

<bundles_post_ra>
// kernel: tpu_custom_call.1
= control target key start
LH: loop header
LB: loop body
LE: loop exit
PB: predicated region body
PF: predicated region fallthrough
CT: control target
= control target key end

     0   :  { %s2301_s0 = inlined_call_operand.hbm [shape: bf16[2,8,32], index: 0, kind: input, shape index: {}]   ;;  %s2302_s1 = inlined_call_operand.hbm [shape: bf16[2,8,32], index: 1, kind: input, shape index: {}]   ;;  %s2303_s2 = inlined_call_operand.hbm [shape: bf16[32,32], index: 2, kind: input, shape index: {}]   ;;  %s2304_s3 = inlined_call_operand.hbm [shape: bf16[32,64], index: 3, kind: input, shape index: {}]   ;;  %s2305_s4 = inlined_call_operand.hbm [shape: bf16[32,32], index: 4, kind: input, shape index: {}]   ;;  %s2306_s5 = inlined_call_operand.vmem [shape: f32[1,32], index: 5, kind: input, shape index: {}]   ;;  %s2307_s6 = inlined_call_operand.hbm [shape: f32[2,8,32], index: 6, kind: output, shape index: {}]  }
   0x1   :  { %2314 = sst [smem:[#allocation19_spill]] %s2303_s2 }
   0x2   :  { %2315 = sst [smem:[#allocation20_spill]] %s2304_s3 }
   0x3   :  { %2316 = sst [smem:[#allocation21_spill]] %s2305_s4 }
   0x4   :  { %11 = vsyncpa [#allocation3], 0 }
   0x5   :  { %13 = vsyncpa [#allocation3 + $0x1], 0 }
   0x6   :  { %14 = vsyncpa [#allocation6], 0 }
   0x7   :  { %16 = vsyncpa [#allocation6 + $0x1], 0 }
   0x8   :  { %17 = vsyncpa [#allocation9], 0 }
   0x9   :  { %18 = vsyncpa [#allocation4], 0 }
   0xa   :  { %20 = vsyncpa [#allocation4 + $0x1], 0  ;;  %s1869_s21 = smov 0   ;;  %s1871_s22 = smov 0  }
   0xb   :  { %s1873_s23 = smov 0   ;;  %s1875_s24 = smov 0  }
   0xc   :  { %s1877_s25 = smov 0   ;;  %s1879_s26 = smov 0  }
   0xd LB: > { %2317 = sst [smem:[#allocation17_spill]] %s1795_s21  ;;  %s1900_s27 = sadd.s32 4294967295, %s1815_s26   ;;  %s1815_s26 = sphi %s1879_s26, %s26_s26   ;;  %s1811_s25 = sphi %s1877_s25, %s2345_s25   ;;  %s1807_s24 = sphi %s1875_s24, %s2344_s24   ;;  %s1803_s23 = sphi %s1873_s23, %s2343_s23   ;;  %s1799_s22 = sphi %s1871_s22, %s2342_s22   ;;  %s1795_s21 = sphi %s1869_s21, %s2341_s21  }
   0xe   : > { %s1290_s28 = sadd.s32 4294967294, %s1815_s26   ;;  %p60_p0 = scmp.ne.s32.totalorder %s1799_s22, %s1795_s21 }
   0xf   : > { %p2308_p1 = scmp.eq.s32.totalorder %s1900_s27, 0  ;;  %p202_p3 = scmp.eq.s32.totalorder %s1290_s28, 1 }
  0x10   : > { %p1291_p5 = scmp.ge.s32.totalorder %s1815_s26, 1  ;;  %p209_p7 = scmp.lt.s32.totalorder %s1815_s26, 3 }
  0x11   : > { %p1909_p4 = por %p2308_p1, %p60_p0  ;;  %p1914_p6 = por %p202_p3, %p60_p0 }
  0x12   : > { %p1919_p8 = pnand %p1291_p5, %p209_p7  ;;  %s1817_s8 = smov [#allocation7]  }
  0x13   : > { %s2318_s29 = scalar_select %p1909_p4, 1, 0 }
  0x14   : > { %s2319_s30 = scalar_select %p1914_p6, 1, 0 }
  0x15   : > { %s2321_s7 = scalar_select %p1919_p8, 1, 0 }
  0x16   : > { %2320 = sst [smem:[#allocation18_spill]] %s2319_s30  ;;  %s221_s9 = sshll.u32 %s1817_s8, 4  ;;  %s1923_s9 = int_to_ptr.vmem [resolvable:$true] %s221_s9 }
  0x17   : > { %p1466_p9 = pneg %p1919_p8  ;;  %s1818_s11 = smov [#allocation8]  }
  0x18   : > { %s234_s12 = sshll.u32 %s1818_s11, 4  ;;  %s1819_s13 = smov [#allocation10]   ;;  %s1934_s12 = int_to_ptr.vmem [resolvable:$true] %s234_s12 }
  0x19   : > { %p1930_p11 = pnand %p1466_p9, %p2308_p1  ;;  %s1936_s14 = sshll.u32 %s1819_s13, 4  ;;  %s248_s14 = int_to_ptr.vmem [resolvable:$true] %s1936_s14 }
  0x1a   : > { %s2323_s2 = sld [smem:[#allocation19_spill]] }
  0x1b   : > { %p1946_p13 = pneg %p1930_p11 }
  0x20   : > { %s1577_s17 = scalar_lea.hbm %s2323_s2, 256 }
  0x21   : > { %p1578_p12 = scmp.ne.s32.totalorder %s2323_s2, %s1577_s17  ;;  %p1584_p5 = scmp.lt.u32.totalorder %s1577_s17, %s2323_s2 }
  0x23   : > { %p1580_p0 = pnand %p1946_p13, %p1578_p12 }
  0x25   : > { %p1581_p3 = pneg %p1580_p0 }
  0x27   : > { %p1586_p7 = pnand %p1584_p5, %p1581_p3 }
  0x29   : > { %1589 = shalt.err (!%p1586_p7)
}
  0x2a   : > { %s1590_s11 = scalar_lea.vmem %s1923_s9, 256  ;;  %p1598_p2 = scmp.lt.s32.totalorder %s1923_s9, %s1923_s9 }
  0x2b   : > { %p1591_p9 = scmp.ne.s32.totalorder %s1923_s9, %s1590_s11  ;;  %p1599_p6 = scmp.lt.s32.totalorder %s1590_s11, %s1590_s11 }
  0x2d   : > { %p1593_p10 = pnand %p1591_p9, %p1946_p13  ;;  %p1600_p12 = por %p1599_p6, %p1598_p2 }
  0x2f   : > { %p1594_p1 = pneg %p1593_p10 }
  0x31   : > { %p1601_p0 = pnand %p1600_p12, %p1594_p1 }
  0x33   : > { %1604 = shalt.err (!%p1601_p0)
}
  0x34   : > { %s1820_s13 = smov 64   ;;  %s1821_s15 = smov 4  }
  0x35   : > { %1469 = dma.hbm_to_vmem [thread:$0]  (!%p1930_p11), %s2323_s2, 256, %s1923_s9, [#allocation6], %s1820_s13, %s1820_s13, %s1821_s15  }
  0x36   : > { %s2325_s3 = sld [smem:[#allocation20_spill]] }
  0x3c   : > { %s1605_s28 = scalar_lea.hbm %s2325_s3, 256 }
  0x3d   : > { %p1606_p1 = scmp.ne.s32.totalorder %s2325_s3, %s1605_s28  ;;  %p1612_p10 = scmp.lt.u32.totalorder %s1605_s28, %s2325_s3 }
  0x3f   : > { %p1608_p2 = pnand %p1606_p1, %p1946_p13 }
  0x41   : > { %p1609_p6 = pneg %p1608_p2 }
  0x43   : > { %p1614_p3 = pnand %p1612_p10, %p1609_p6 }
  0x45   : > { %1617 = shalt.err (!%p1614_p3)
}
  0x46   : > { %s1618_s9 = scalar_lea.vmem %s1934_s12, 256  ;;  %p1626_p12 = scmp.lt.s32.totalorder %s1934_s12, %s1934_s12 }
  0x47   : > { %p1619_p5 = scmp.ne.s32.totalorder %s1934_s12, %s1618_s9  ;;  %p1627_p0 = scmp.lt.s32.totalorder %s1618_s9, %s1618_s9 }
  0x49   : > { %p1621_p7 = pnand %p1619_p5, %p1946_p13  ;;  %p1628_p1 = por %p1627_p0, %p1626_p12 }
  0x4b   : > { %p1622_p9 = pneg %p1621_p7 }
  0x4d   : > { %p1629_p2 = pnand %p1628_p1, %p1622_p9 }
  0x4f   : > { %1632 = shalt.err (!%p1629_p2)
}
  0x50   : > { %1472 = dma.hbm_to_vmem [thread:$0]  (!%p1930_p11), %s2325_s3, 256, %s1934_s12, [#allocation9], %s1820_s13, %s1820_s13, %s1821_s15  }
  0x51   : > { %s2326_s4 = sld [smem:[#allocation21_spill]] }
  0x57   : > { %s1633_s18 = scalar_lea.hbm %s2326_s4, 256 }
  0x58   : > { %p1634_p6 = scmp.ne.s32.totalorder %s2326_s4, %s1633_s18  ;;  %p1640_p5 = scmp.lt.u32.totalorder %s1633_s18, %s2326_s4 }
  0x5a   : > { %p1636_p10 = pnand %p1634_p6, %p1946_p13 }
  0x5c   : > { %p1637_p3 = pneg %p1636_p10 }
  0x5e   : > { %p1642_p7 = pnand %p1640_p5, %p1637_p3 }
  0x60   : > { %1645 = shalt.err (!%p1642_p7)
}
  0x61   : > { %s1646_s9 = scalar_lea.vmem %s248_s14, 256  ;;  %p1654_p1 = scmp.lt.s32.totalorder %s248_s14, %s248_s14 }
  0x62   : > { %p1647_p9 = scmp.ne.s32.totalorder %s248_s14, %s1646_s9  ;;  %p1655_p2 = scmp.lt.s32.totalorder %s1646_s9, %s1646_s9 }
  0x64   : > { %p1649_p12 = pnand %p1647_p9, %p1946_p13  ;;  %p1656_p4 = por %p1655_p2, %p1654_p1 }
  0x66   : > { %p1650_p0 = pneg %p1649_p12 }
  0x68   : > { %p1657_p8 = pnand %p1656_p4, %p1650_p0 }
  0x6a   : > { %1660 = shalt.err (!%p1657_p8)
}
  0x6b   : > { %1475 = dma.hbm_to_vmem [thread:$0]  (!%p1930_p11), %s2326_s4, 256, %s248_s14, [#allocation9], %s1820_s13, %s1820_s13, %s1821_s15  }
  0x6c   : > { %s47_s20 = sadd.s32 1, %s1803_s23  ;;  %s38_s10 = sadd.s32 1, %s1811_s25 }
  0x6d   : > { %p54_p4 = scmp.ne.s32.totalorder %s1803_s23, %s1799_s22  ;;  %p40_p8 = scmp.ge.s32.totalorder %s38_s10, 2 }
  0x6e   : > { %p55_p13 = scmp.eq.s32.totalorder %s1815_s26, 0  ;;  %p2327_p6 = scmp.eq.s32.totalorder %s1900_s27, 1 }
  0x6f   : > { %p1490_p3 = scmp.lt.s32.totalorder %s1815_s26, 2  ;;  %s2347_s10 = smov (%p40_p8, %s38_s10), 0 }
  0x70   : > { %p2025_p10 = por %p2327_p6, %p54_p4  ;;  %p56_p5 = por %p55_p13, %p54_p4 }
  0x71   : > { %s264_s16 = sand.u32 1, %s1803_s23   ;;  %s42_s17 = ssub.s32 %s1811_s25, %s2347_s10 }
  0x72   : > { %s2328_s30 = scalar_select %p2025_p10, 1, 0 }
  0x73   : > { %p45_p11 = scmp.eq.s32.totalorder %s42_s17, 0  ;;  %s2035_s14 = sshll.u32 %s264_s16, 2 }
  0x74   : > { %s1297_s13 = sshll.u32 %s1811_s25, 6  ;;  %s268_s8 = scalar_lea.vmem [#allocation2], %s2035_s14 }
  0x75   : > { %s2039_s15 = scalar_select %p45_p11, %s1803_s23, %s47_s20  }
  0x76   : > { %s2044_s28 = scalar_lea.hbm %s2301_s0, %s1297_s13  ;;  %s276_s11 = sshll.u32 %s268_s8, 4  ;;  %s2047_s11 = int_to_ptr.vmem [resolvable:$true] %s276_s11 }
  0x77   : > { %p2051_p7 = pnand %p1490_p3, %p56_p5  ;;  %s2058_s20 = scalar_lea.hbm %s2302_s1, %s1297_s13 }
  0x78   : > { %s283_s17 = sand.u32 1, %s1815_s26   ;;  %s265_s18 = scalar_lea.sflag [#allocation3], %s264_s16 }
  0x79   : > { %s1661_s19 = scalar_lea.hbm %s2044_s28, 64  ;;  %p1663_p12 = pneg %p2051_p7 }
  0x7a   : > { %p1662_p9 = scmp.ne.s32.totalorder %s2044_s28, %s1661_s19  ;;  %s1666_s3 = scalar_lea.hbm %s2301_s0, 128 }
  0x7b   : > { %p1667_p2 = scmp.lt.u32.totalorder %s2044_s28, %s2301_s0  ;;  %p1668_p4 = scmp.lt.u32.totalorder %s1666_s3, %s1661_s19 }
  0x7c   : > { %p1664_p0 = pnand %p1663_p12, %p1662_p9  ;;  %p1670_p13 = scmp.lt.u32.totalorder %s1661_s19, %s2044_s28 }
  0x7d   : > { %p1669_p8 = por %p1668_p4, %p1667_p2 }
  0x7e   : > { %p1665_p1 = pneg %p1664_p0 }
  0x7f   : > { %p1671_p6 = por %p1670_p13, %p1669_p8 }
  0x81   : > { %p1672_p3 = pnand %p1671_p6, %p1665_p1 }
  0x83   : > { %1675 = shalt.err (!%p1672_p3)
}
  0x84   : > { %s1676_s16 = scalar_lea.vmem %s2047_s11, 64  ;;  %s1822_s2 = smov [#allocation2]  }
  0x85   : > { %p1677_p5 = scmp.ne.s32.totalorder %s2047_s11, %s1676_s16  ;;  %s1681_s13 = sshll.u32 %s1822_s2, 4  ;;  %s1682_s13 = int_to_ptr.vmem [resolvable:$false] %s1681_s13 }
  0x86   : > { %s1683_s4 = scalar_lea.vmem %s1682_s13, 128  ;;  %p1684_p0 = scmp.lt.s32.totalorder %s2047_s11, %s1682_s13 }
  0x87   : > { %p1679_p11 = pnand %p1677_p5, %p1663_p12  ;;  %p1685_p2 = scmp.lt.s32.totalorder %s1683_s4, %s1676_s16 }
  0x89   : > { %p1680_p9 = pneg %p1679_p11  ;;  %p1686_p4 = por %p1685_p2, %p1684_p0 }
  0x8b   : > { %p1687_p8 = pnand %p1686_p4, %p1680_p9 }
  0x8d   : > { %1690 = shalt.err (!%p1687_p8)
}
  0x8e   : > { %1479 = dma.hbm_to_vmem [thread:$0]  (!%p2051_p7), %s2044_s28, 64, %s2047_s11, %s265_s18  }
  0x8f   : > { %s287_s3 = scalar_lea.vmem [#allocation5], %s2035_s14  ;;  %s284_s19 = scalar_lea.sflag [#allocation6], %s283_s17 }
  0x90   : > { %s294_s21 = sshll.u32 %s287_s3, 4  ;;  %s1691_s8 = scalar_lea.hbm %s2058_s20, 64  ;;  %s295_s21 = int_to_ptr.vmem [resolvable:$true] %s294_s21 }
  0x91   : > { %p1692_p1 = scmp.ne.s32.totalorder %s2058_s20, %s1691_s8  ;;  %s1696_s2 = scalar_lea.hbm %s2302_s1, 128 }
  0x92   : > { %p1697_p3 = scmp.lt.u32.totalorder %s2058_s20, %s2302_s1  ;;  %p1698_p5 = scmp.lt.u32.totalorder %s1696_s2, %s1691_s8 }
  0x93   : > { %p1694_p13 = pnand %p1692_p1, %p1663_p12  ;;  %p1700_p9 = scmp.lt.u32.totalorder %s1691_s8, %s2058_s20 }
  0x94   : > { %p1699_p11 = por %p1698_p5, %p1697_p3 }
  0x95   : > { %p1695_p6 = pneg %p1694_p13 }
  0x96   : > { %p1701_p0 = por %p1700_p9, %p1699_p11 }
  0x98   : > { %p1702_p2 = pnand %p1701_p0, %p1695_p6 }
  0x9a   : > { %1705 = shalt.err (!%p1702_p2)
}
  0x9b   : > { %s1706_s14 = scalar_lea.vmem %s295_s21, 64  ;;  %s1823_s28 = smov [#allocation5]  }
  0x9c   : > { %p1707_p4 = scmp.ne.s32.totalorder %s295_s21, %s1706_s14  ;;  %s1711_s11 = sshll.u32 %s1823_s28, 4  ;;  %s1712_s11 = int_to_ptr.vmem [resolvable:$false] %s1711_s11 }
  0x9d   : > { %s1713_s17 = scalar_lea.vmem %s1712_s11, 128  ;;  %p1714_p13 = scmp.lt.s32.totalorder %s295_s21, %s1712_s11 }
  0x9e   : > { %p1709_p8 = pnand %p1707_p4, %p1663_p12  ;;  %p1715_p10 = scmp.lt.s32.totalorder %s1713_s17, %s1706_s14 }
  0xa0   : > { %p1710_p1 = pneg %p1709_p8  ;;  %p1716_p3 = por %p1715_p10, %p1714_p13 }
  0xa2   : > { %p1717_p5 = pnand %p1716_p3, %p1710_p1 }
  0xa4   : > { %1720 = shalt.err (!%p1717_p5)
}
  0xa5   : > { %1482 = dma.hbm_to_vmem [thread:$0]  (!%p2051_p7), %s2058_s20, 64, %s295_s21, %s284_s19  }
  0xa6   : > { %p2330_p6 = scmp.ne.s32.totalorder %s2321_s7, 0 }
  0xa7   : > { %s2111_s18 = sand.u32 (!%p2330_p6), 1, %s1799_s22   ;;  %p2331_p12 = scmp.ne.s32.totalorder (!%p2330_p6), %s2318_s29, 0 }
  0xa8   : > { %303 = sbr.rel (%p2330_p6) target bundleno = 2330 (0x91a), region = 44  ;;  %s1301_s3 = sshll.u32 (!%p2330_p6), %s2111_s18, 2 }
  0xa9   : > { %s306_s8 = scalar_lea.sflag (!%p2330_p6), [#allocation3], %s2111_s18  ;;  %s309_s12 = scalar_lea.vmem (!%p2330_p6), [#allocation2], %s1301_s3 }
  0xaf   : > { %1774 = dma.done.wait (%p2331_p12), %s306_s8, 64  }
  0xb0   : > { %1776 = vsyncadd (%p2331_p12), %s306_s8, 4294967232  ;;  %s314_s9 = sand.u32 1, %s1900_s27   ;;  %s318_s7 = scalar_lea.vmem [#allocation5], %s1301_s3 }
  0xb1   : > { %s315_s20 = scalar_lea.sflag [#allocation6], %s314_s9 }
  0xb2   : > { %1778 = dma.done.wait (%p2331_p12), %s315_s20, 64  }
  0xb3   : > { %1780 = vsyncadd (%p2331_p12), %s315_s20, 4294967232  ;;  %p2332_p10 = scmp.eq.s32.totalorder %s1900_s27, 0 }
  0xb5   : > { %1782 = dma.done.wait (%p2332_p10), [#allocation6], 256   ;;  %p2333_p7 = pmov %p2332_p10 }
  0xb7   : > { %1784 = vsyncadd (%p2333_p7), [#allocation6], 4294967040  ;;  %p2334_p11 = pmov %p2333_p7 }
  0xb8   : > { %p2335_p9 = pmov %p2333_p7 }
  0xb9   : > { %1786 = dma.done.wait (%p2334_p11), [#allocation9], 512  }
  0xba   : > { %1788 = vsyncadd (%p2335_p9), [#allocation9], 4294966784  ;;  %v1824_v0 = vmov 0.0   ;;  %vm1825_vm0 = vmmov 0   ;;  %v1557_v1 = vld [vmem:[#allocation8] sm:$0xff]   ;;  %v1558_v2 = vld [vmem:[#allocation7] sm:$0xff]   ;;  %v487_v23 = vlaneseq }
  0xbb   : > { %1368 = vmatprep.subr.bf16.mxu1 %v1824_v0  ;;  %1360 = vmatprep.subr.bf16.mxu0 %v1824_v0  ;;  %v1559_v3 = vld [vmem:[#allocation8 + $0x8] sm:$0xff]   ;;  %v1560_v4 = vld [vmem:[#allocation7 + $0x8] sm:$0xff]   ;;  %vm383_vm1 = vcmask 261120   ;;  %v365_v6 = vld [vmem:[%s309_s12] sm:$0xf]  ;;  %vm496_vm2 = vcmask 64512  }
  0xbc   : > { %1372 = vmatprep.mubr.msk.bf16.mxu1 %vm1825_vm0, %v1824_v0  ;;  %1364 = vmatprep.mubr.msk.bf16.mxu0 %vm1825_vm0, %v1824_v0  ;;  %v366_v5 = vld [vmem:[%s318_s7] sm:$0xf]  ;;  %s1826_s27 = smov 120   ;;  %s1827_s29 = smov 96   ;;  %vm560_vm3 = vcmask 1043456   ;;  %v2165_v24 = vshrl.u32 %v487_v23, 7 }
  0xbd   : > { %1369 = vmatpush3.bf16.msra.mxu1 %v1557_v1  ;;  %1361 = vmatpush3.bf16.msra.mxu0 %v1558_v2  ;;  %v2167_v25 = vand.u32 127, %v487_v23  ;;  %s1828_s21 = smov 88   ;;  %s1829_s19 = smov 112   ;;  %v607_v49 = vld [vmem:[#allocation10] sm:$0xf] }
  0xbe   : > { %1370 = vmatprep.subr.bf16.mxu1 %v1824_v0  ;;  %1362 = vmatprep.subr.bf16.mxu0 %v1824_v0  ;;  %s1830_s16 = smov 104   ;;  %v772_v53 = vsel %vm560_vm3, %v607_v49, 0  ;;  %v721_v54 = vld [vmem:[#allocation10 + $0x4] sm:$0xf]  ;;  %s1831_s2 = smov 80  }
  0xbf   : > { %vm493_vm4 = vcmp.le.s32.totalorder %v2167_v25, %v2165_v24  ;;  %v726_v55 = vsel %vm560_vm3, %v721_v54, 0  ;;  %s1832_s13 = smov 72   ;;  %s1306_s4 = sshll.u32 %s2111_s18, 3 }
  0xc0   : > { %s1327_s11 = sshll.u32 %s1807_s24, 7  ;;  %s363_s17 = scalar_lea.vmem [#allocation11], %s1306_s4 }
  0xc1   : > { %1371 = vmatpush3.bf16.msra.mxu1 %v1559_v3  ;;  %1363 = vmatpush3.bf16.msra.mxu0 %v1560_v4  ;;  %s1158_s3 = sshll.u32 %s363_s17, 4  ;;  %s2251_s9 = scalar_lea.hbm %s2307_s6, %s1327_s11  ;;  %s2253_s3 = int_to_ptr.vmem [resolvable:$true] %s1158_s3 }
  0xc2   : > { %1382 = vmatprep.subr.bf16.mxu1 %v1824_v0  ;;  %1376 = vmatprep.subr.bf16.mxu0 %v1824_v0  ;;  %s1144_s24 = scalar_lea.sflag [#allocation4], %s2111_s18  ;;  %s1721_s20 = scalar_lea.vmem %s2253_s3, 128 }
  0xc3   : > { %p1722_p0 = scmp.ne.s32.totalorder %s2253_s3, %s1721_s20  ;;  %p2336_p2 = scmp.ne.s32.totalorder %s2328_s30, 0 }
  0xc4   : > { %1373 = vmatmul.mubr.msk.bf16.vlgmr.msra.gmra.mrb[0].mxu1 %vm383_vm1, %v366_v5  ;;  %1365 = vmatmul.mubr.msk.bf16.vlgmr.msra.gmra.mrb[0].mxu0 %vm383_vm1, %v365_v6  ;;  %s1833_s7 = smov [#allocation11]  }
  0xc5   : > { %1384 = vmatprep.mubr.msk.bf16.mxu1 %vm1825_vm0, %v1824_v0  ;;  %1378 = vmatprep.mubr.msk.bf16.mxu0 %vm1825_vm0, %v1824_v0  ;;  %p1723_p4 = pnand %p1722_p0, %p2336_p2 }
  0xc7   : > { %p1724_p8 = pneg %p1723_p4 }
 0x197   : > { %v480_v7 = vpop.f32.mrb[0].mxu1  ;;  %v421_v10 = vpop.f32.mrb[0].mxu0 }
 0x198   : > { %v2148_v8 = vpack.c.bf16 %v480_v7, %v480_v7  ;;  %v1374_v9 = vpop.f32.mrb[1].mxu1  ;;  %v1366_v12 = vpop.f32.mrb[1].mxu0  ;;  %v494_v14 = vpack.c.bf16 %v421_v10, %v421_v10 }
 0x199   : > { %v483_v11 = vpop.f32.mrb[2].mxu1  ;;  %v424_v16 = vpop.f32.mrb[2].mxu0 }
 0x19a   : > { %611 = vrot.lane.b32.xlu0 %v2148_v8, %s1826_s27  ;;  %v1375_v13 = vpop.f32.mrb[3].mxu1  ;;  %v501_v15 = vsel %vm496_vm2, %v2148_v8, 0  ;;  %v1367_v17 = vpop.f32.mrb[3].mxu0 }
 0x19b   : > { %1377 = vmatpush3.bf16.xpose.msra.mxu0 %v501_v15 }
 0x19c   : > { %1388 = vmatprep.subr.bf16.mxu0 %v1824_v0 }
 0x19e   : > { %609 = vrot.lane.b32.xlu0 %v494_v14, %s1826_s27  ;;  %s1725_s27 = sshll.u32 %s1833_s7, 4  ;;  %s1726_s27 = int_to_ptr.vmem [resolvable:$false] %s1725_s27 }
 0x19f   : > { %p1728_p1 = scmp.lt.s32.totalorder %s2253_s3, %s1726_s27 }
 0x1a2   : > { %555 = vrot.lane.b32.xlu0 %v2148_v8, %s1827_s29  ;;  %1379 = vmatmul.mubr.msk.bf16.vlgmr.msra.gmra.mrb[4].mxu0 %vm496_vm2, %v494_v14  ;;  %s1727_s29 = scalar_lea.vmem %s1726_s27, 256 }
 0x1a3   : > { %1390 = vmatprep.mubr.msk.bf16.mxu0 %vm1825_vm0, %v1824_v0  ;;  %p1729_p13 = scmp.lt.s32.totalorder %s1727_s29, %s1721_s20 }
 0x1a5   : > { %p1730_p3 = por %p1729_p13, %p1728_p1 }
 0x1a7   : > { %p1731_p5 = pnand %p1730_p3, %p1724_p8 }
 0x20c   : > { %v612_v18 = vpop.permute.xlu0 %611 }
 0x20d   : > { %v617_v19 = vsel %vm496_vm2, %v612_v18, 0 }
 0x20e   : > { %1389 = vmatpush3.bf16.xpose.msra.mxu0 %v617_v19 }
 0x20f   : > { %1400 = vmatprep.subr.bf16.mxu0 %v1824_v0 }
 0x210   : > { %v610_v20 = vpop.permute.xlu0 %609 }
 0x214   : > { %v556_v21 = vpop.permute.xlu0 %555 }
 0x215   : > { %v562_v22 = vsel %vm560_vm3, %v556_v21, 0  ;;  %1391 = vmatmul.mubr.msk.bf16.vlgmr.msra.gmra.mrb[8].mxu0 %vm496_vm2, %v610_v20 }
 0x216   : > { %1383 = vmatpush3.bf16.msra.mxu1 %v562_v22  ;;  %1402 = vmatprep.mubr.msk.bf16.mxu0 %vm1825_vm0, %v1824_v0 }
 0x217   : > { %1394 = vmatprep.subr.bf16.mxu1 %v1824_v0  ;;  %1401 = vmatpush3.bf16.msra.mxu0 %v726_v55 }
 0x218   : > { %1412 = vmatprep.subr.bf16.mxu0 %v1824_v0 }
 0x275   : > { %v537_v26 = vpop.f32.mrb[4].mxu0 }
 0x276   : > { %v543_v27 = vsel %vm493_vm4, %v537_v26, -inf  ;;  %v1380_v28 = vpop.f32.mrb[5].mxu0 }
 0x277   : > { %v540_v29 = vpop.f32.mrb[6].mxu0  ;;  %v544_v30 = vsel %vm496_vm2, %v543_v27, -inf }
 0x278   : > { %545 = vmax.xlane.f32.xlu1 %v544_v30  ;;  %v1381_v31 = vpop.f32.mrb[7].mxu0 }
 0x2e8   : > { %v653_v32 = vpop.f32.mrb[8].mxu0 }
 0x2e9   : > { %v659_v33 = vsel %vm493_vm4, %v653_v32, -inf  ;;  %v1392_v34 = vpop.f32.mrb[9].mxu0 }
 0x2ea   : > { %v656_v35 = vpop.f32.mrb[10].mxu0  ;;  %v660_v36 = vsel %vm496_vm2, %v659_v33, -inf }
 0x2eb   : > { %661 = vmax.xlane.f32.xlu1 %v660_v36  ;;  %v1393_v37 = vpop.f32.mrb[11].mxu0 }
 0x2fc   : > { %670 = vrot.lane.b32.xlu1 %v2148_v8, %s1828_s21 }
 0x300   : > { %816 = vrot.lane.b32.xlu1 %v2148_v8, %s1829_s19 }
 0x304   : > { %814 = vrot.lane.b32.xlu1 %v494_v14, %s1829_s19 }
 0x305   : > { %v546_v38 = vpop.xlane.xlu1 %545 }
 0x306   : > { %v547_v39 = vsub.f32 %v543_v27, %v546_v38 }
 0x308   : > { %v548_v40 = vmul.f32 1.442695, %v547_v39 }
 0x30a   : > { %1561 = vpow2.f32 %v548_v40 }
 0x314   : > { %v1562_v41 = vpop.eup %1561 }
 0x315   : > { %v553_v42 = vpack.c.bf16 %v1562_v41, %v1562_v41  ;;  %v550_v43 = vsel %vm496_vm2, %v1562_v41, 0.0  ;;  %v926_v41 = vld [vmem:[#allocation10 + $0x8] sm:$0xf] }
 0x317   : > { %1385 = vmatmul.mubr.msk.bf16.vlgmr.msra.gmra.mrb[4].mxu1 %vm496_vm2, %v553_v42  ;;  %v931_v42 = vsel %vm560_vm3, %v926_v41, 0 }
 0x318   : > { %1396 = vmatprep.mubr.msk.bf16.mxu1 %vm1825_vm0, %v1824_v0 }
 0x328   : > { %551 = vadd.xlane.f32.xlu1 %v550_v43 }
 0x339   : > { %974 = vrot.lane.b32.xlu1 %v494_v14, %s1830_s16 }
 0x378   : > { %v662_v44 = vpop.xlane.xlu1 %661 }
 0x379   : > { %v663_v45 = vsub.f32 %v659_v33, %v662_v44 }
 0x37b   : > { %v664_v46 = vmul.f32 1.442695, %v663_v45 }
 0x37c   : > { %v671_v47 = vpop.permute.xlu1 %670 }
 0x37d   : > { %1563 = vpow2.f32 %v664_v46  ;;  %v676_v48 = vsel %vm560_vm3, %v671_v47, 0 }
 0x37e   : > { %1395 = vmatpush3.bf16.msra.mxu1 %v676_v48 }
 0x37f   : > { %1406 = vmatprep.subr.bf16.mxu1 %v1824_v0 }
 0x380   : > { %v817_v56 = vpop.permute.xlu1 %816 }
 0x381   : > { %v822_v14 = vsel %vm496_vm2, %v817_v56, 0 }
 0x384   : > { %v815_v57 = vpop.permute.xlu1 %814 }
 0x387   : > { %v1564_v50 = vpop.eup %1563 }
 0x388   : > { %v666_v51 = vsel %vm496_vm2, %v1564_v50, 0.0  ;;  %v669_v52 = vpack.c.bf16 %v1564_v50, %v1564_v50 }
 0x389   : > { %667 = vadd.xlane.f32.xlu0 %v666_v51 }
 0x38a   : > { %1397 = vmatmul.mubr.msk.bf16.vlgmr.msra.gmra.mrb[8].mxu1 %vm496_vm2, %v669_v52 }
 0x38b   : > { %1407 = vmatpush3.bf16.msra.mxu1 %v772_v53  ;;  %1408 = vmatprep.mubr.msk.bf16.mxu1 %vm1825_vm0, %v1824_v0 }
 0x38c   : > { %1418 = vmatprep.subr.bf16.mxu1 %v1824_v0 }
 0x39f   : > { %875 = vrot.lane.b32.xlu0 %v2148_v8, %s1831_s2 }
 0x3b5   : > { %v552_v58 = vpop.xlane.xlu1 %551 }
 0x3b6   : > { %1565 = vrcp.f32 %v552_v58 }
 0x3b9   : > { %v975_v40 = vpop.permute.xlu1 %974 }
 0x3c0   : > { %v1566_v59 = vpop.eup %1565 }
 0x3ea   : > { %v598_v60 = vpop.f32.mrb[4].mxu1 }
 0x3eb   : > { %v605_v61 = vmul.f32 %v1566_v59, %v598_v60  ;;  %v1386_v62 = vpop.f32.mrb[5].mxu1 }
 0x3ec   : > { %v601_v63 = vpop.f32.mrb[6].mxu1 }
 0x3ed   : > { %v606_v1 = vpack.c.bf16 %v605_v61, %v605_v61  ;;  %v1387_v2 = vpop.f32.mrb[7].mxu1 }
 0x3ef   : > { %1409 = vmatmul.mubr.msk.bf16.vlgmr.msra.gmra.mrb[12].mxu1 %vm496_vm2, %v606_v1 }
 0x3f0   : > { %1420 = vmatprep.mubr.msk.bf16.mxu1 %vm1825_vm0, %v1824_v0 }
 0x416   : > { %v668_v3 = vpop.xlane.xlu0 %667 }
 0x417   : > { %1567 = vrcp.f32 %v668_v3 }
 0x41a   : > { %v876_v4 = vpop.permute.xlu0 %875 }
 0x41b   : > { %v881_v5 = vsel %vm560_vm3, %v876_v4, 0 }
 0x41c   : > { %1419 = vmatpush3.bf16.msra.mxu1 %v881_v5 }
 0x41d   : > { %1430 = vmatprep.subr.bf16.mxu1 %v1824_v0 }
 0x421   : > { %v1568_v6 = vpop.eup %1567 }
 0x45d   : > { %v712_v7 = vpop.f32.mrb[8].mxu1 }
 0x45e   : > { %v719_v9 = vmul.f32 %v1568_v6, %v712_v7  ;;  %v1398_v10 = vpop.f32.mrb[9].mxu1 }
 0x45f   : > { %v715_v11 = vpop.f32.mrb[10].mxu1 }
 0x460   : > { %v720_v12 = vpack.c.bf16 %v719_v9, %v719_v9  ;;  %v1399_v13 = vpop.f32.mrb[11].mxu1 }
 0x462   : > { %1403 = vmatmul.mubr.msk.bf16.vlgmr.msra.gmra.mrb[12].mxu0 %vm496_vm2, %v720_v12 }
 0x463   : > { %1413 = vmatpush3.bf16.xpose.msra.mxu0 %v822_v14  ;;  %1414 = vmatprep.mubr.msk.bf16.mxu0 %vm1825_vm0, %v1824_v0 }
 0x464   : > { %1424 = vmatprep.subr.bf16.mxu0 %v1824_v0 }
 0x46a   : > { %1415 = vmatmul.mubr.msk.bf16.vlgmr.msra.gmra.mrb[16].mxu0 %vm496_vm2, %v815_v57 }
 0x46b   : > { %1426 = vmatprep.mubr.msk.bf16.mxu0 %vm1825_vm0, %v1824_v0  ;;  %1425 = vmatpush3.bf16.msra.mxu0 %v931_v42 }
 0x46c   : > { %1436 = vmatprep.subr.bf16.mxu0 %v1824_v0 }
 0x4c2   : > { %v808_v15 = vpop.f32.mrb[12].mxu1 }
 0x4c3   : > { %v1410_v16 = vpop.f32.mrb[13].mxu1 }
 0x4c4   : > { %v811_v17 = vpop.f32.mrb[14].mxu1 }
 0x4c5   : > { %v1411_v18 = vpop.f32.mrb[15].mxu1 }
 0x535   : > { %v762_v19 = vpop.f32.mrb[12].mxu0 }
 0x536   : > { %v2210_v20 = vadd.f32 %v808_v15, %v762_v19  ;;  %v1404_v21 = vpop.f32.mrb[13].mxu0  ;;  %v1325_v15 = vld [vmem:[%s2306_s5] ss:$0 sm:$0xff] }
 0x537   : > { %v765_v22 = vpop.f32.mrb[14].mxu0 }
 0x538   : > { %v1405_v23 = vpop.f32.mrb[15].mxu0 }
 0x53d   : > { %v858_v26 = vpop.f32.mrb[16].mxu0 }
 0x53e   : > { %v864_v27 = vsel %vm493_vm4, %v858_v26, -inf  ;;  %v1416_v28 = vpop.f32.mrb[17].mxu0 }
 0x53f   : > { %v861_v29 = vpop.f32.mrb[18].mxu0  ;;  %v865_v30 = vsel %vm496_vm2, %v864_v27, -inf }
 0x540   : > { %866 = vmax.xlane.f32.xlu0 %v865_v30  ;;  %v1417_v31 = vpop.f32.mrb[19].mxu0 }
 0x556   : > { %976 = vrot.lane.b32.xlu0 %v2148_v8, %s1830_s16 }
 0x5cd   : > { %v867_v32 = vpop.xlane.xlu0 %866 }
 0x5ce   : > { %v868_v33 = vsub.f32 %v864_v27, %v867_v32 }
 0x5d0   : > { %v869_v34 = vmul.f32 1.442695, %v868_v33 }
 0x5d1   : > { %v977_v36 = vpop.permute.xlu0 %976 }
 0x5d2   : > { %1569 = vpow2.f32 %v869_v34  ;;  %v982_v39 = vsel %vm496_vm2, %v977_v36, 0 }
 0x5dc   : > { %v1570_v35 = vpop.eup %1569 }
 0x5dd   : > { %v871_v37 = vsel %vm496_vm2, %v1570_v35, 0.0  ;;  %v874_v38 = vpack.c.bf16 %v1570_v35, %v1570_v35 }
 0x5de   : > { %872 = vadd.xlane.f32.xlu0 %v871_v37 }
 0x5df   : > { %1421 = vmatmul.mubr.msk.bf16.vlgmr.msra.gmra.mrb[16].mxu1 %vm496_vm2, %v874_v38 }
 0x5e0   : > { %1431 = vmatpush3.bf16.xpose.msra.mxu1 %v982_v39  ;;  %1432 = vmatprep.mubr.msk.bf16.mxu1 %vm1825_vm0, %v1824_v0 }
 0x5e1   : > { %1442 = vmatprep.subr.bf16.mxu1 %v1824_v0 }
 0x5e7   : > { %1433 = vmatmul.mubr.msk.bf16.vlgmr.msra.gmra.mrb[20].mxu1 %vm496_vm2, %v975_v40 }
 0x5e8   : > { %1444 = vmatprep.mubr.msk.bf16.mxu1 %vm1825_vm0, %v1824_v0 }
 0x5f4   : > { %1035 = vrot.lane.b32.xlu0 %v2148_v8, %s1832_s13 }
 0x66b   : > { %v873_v43 = vpop.xlane.xlu0 %872 }
 0x66c   : > { %1571 = vrcp.f32 %v873_v43 }
 0x66f   : > { %v1036_v48 = vpop.permute.xlu0 %1035 }
 0x670   : > { %v1041_v52 = vsel %vm560_vm3, %v1036_v48, 0 }
 0x676   : > { %v1572_v44 = vpop.eup %1571 }
 0x6b2   : > { %v917_v45 = vpop.f32.mrb[16].mxu1 }
 0x6b3   : > { %v924_v46 = vmul.f32 %v1572_v44, %v917_v45  ;;  %v1422_v47 = vpop.f32.mrb[17].mxu1 }
 0x6b4   : > { %v920_v49 = vpop.f32.mrb[18].mxu1 }
 0x6b5   : > { %v925_v50 = vpack.c.bf16 %v924_v46, %v924_v46  ;;  %v1423_v51 = vpop.f32.mrb[19].mxu1 }
 0x6b7   : > { %1427 = vmatmul.mubr.msk.bf16.vlgmr.msra.gmra.mrb[20].mxu0 %vm496_vm2, %v925_v50 }
 0x6b8   : > { %1437 = vmatpush3.bf16.msra.mxu0 %v1041_v52  ;;  %1438 = vmatprep.mubr.msk.bf16.mxu0 %vm1825_vm0, %v1824_v0  ;;  %v1086_v0 = vld [vmem:[#allocation10 + $0xc] sm:$0xf] }
 0x6b9   : > { %v1091_v24 = vsel %vm560_vm3, %v1086_v0, 0 }
 0x6ba   : > { %v1018_v8 = vpop.f32.mrb[20].mxu1  ;;  %1443 = vmatpush3.bf16.msra.mxu1 %v1091_v24 }
 0x6bb   : > { %v1024_v53 = vsel %vm493_vm4, %v1018_v8, -inf  ;;  %v1434_v54 = vpop.f32.mrb[21].mxu1 }
 0x6bc   : > { %v1021_v55 = vpop.f32.mrb[22].mxu1  ;;  %v1025_v56 = vsel %vm496_vm2, %v1024_v53, -inf }
 0x6bd   : > { %1026 = vmax.xlane.f32.xlu1 %v1025_v56  ;;  %v1435_v57 = vpop.f32.mrb[23].mxu1 }
 0x74a   : > { %v1027_v58 = vpop.xlane.xlu1 %1026 }
 0x74b   : > { %v1028_v59 = vsub.f32 %v1024_v53, %v1027_v58 }
 0x74d   : > { %v1029_v60 = vmul.f32 1.442695, %v1028_v59 }
 0x74f   : > { %1573 = vpow2.f32 %v1029_v60 }
 0x759   : > { %v1574_v61 = vpop.eup %1573 }
 0x75a   : > { %v1031_v62 = vsel %vm496_vm2, %v1574_v61, 0.0  ;;  %v1034_v63 = vpack.c.bf16 %v1574_v61, %v1574_v61 }
 0x75b   : > { %1032 = vadd.xlane.f32.xlu1 %v1031_v62 }
 0x75c   : > { %1439 = vmatmul.mubr.msk.bf16.vlgmr.msra.gmra.mrb[24].mxu0 %vm496_vm2, %v1034_v63 }
 0x78a   : > { %v967_v25 = vpop.f32.mrb[20].mxu0 }
 0x78b   : > { %v973_v1 = vadd.f32 %v967_v25, %v2210_v20  ;;  %v1428_v2 = vpop.f32.mrb[21].mxu0 }
 0x78c   : > { %v970_v3 = vpop.f32.mrb[22].mxu0 }
 0x78d   : > { %v1429_v4 = vpop.f32.mrb[23].mxu0 }
 0x7e8   : > { %v1033_v5 = vpop.xlane.xlu1 %1032 }
 0x7e9   : > { %1575 = vrcp.f32 %v1033_v5 }
 0x7f3   : > { %v1576_v6 = vpop.eup %1575 }
 0x82f   : > { %v1077_v7 = vpop.f32.mrb[24].mxu0 }
 0x830   : > { %v1084_v9 = vmul.f32 %v1576_v6, %v1077_v7  ;;  %v1440_v10 = vpop.f32.mrb[25].mxu0 }
 0x831   : > { %v1080_v11 = vpop.f32.mrb[26].mxu0 }
 0x832   : > { %v1085_v12 = vpack.c.bf16 %v1084_v9, %v1084_v9  ;;  %v1441_v13 = vpop.f32.mrb[27].mxu0 }
 0x834   : > { %1445 = vmatmul.mubr.msk.bf16.vlgmr.msra.gmra.mrb[24].mxu1 %vm496_vm2, %v1085_v12 }
 0x907   : > { %v1127_v14 = vpop.f32.mrb[24].mxu1 }
 0x908   : > { %v1133_v16 = vadd.f32 %v1127_v14, %v973_v1  ;;  %v1446_v17 = vpop.f32.mrb[25].mxu1 }
 0x909   : > { %v1130_v18 = vpop.f32.mrb[26].mxu1 }
 0x90a   : > { %v1141_v19 = vadd.f32 %v1325_v15, %v1133_v16  ;;  %v1447_v20 = vpop.f32.mrb[27].mxu1 }
 0x90c   : > { %1142 = vst.msk [vmem:[%s363_s17] sm:$0xff] %vm383_vm1, %v1141_v19 }
 0x90d   : > { %1734 = shalt.err (!%p1731_p5)
}
 0x90e   : > { %s1735_s18 = scalar_lea.hbm %s2251_s9, 128  ;;  %s1739_s16 = scalar_lea.hbm %s2307_s6, 256 }
 0x90f   : > { %p1736_p6 = scmp.ne.s32.totalorder %s2251_s9, %s1735_s18  ;;  %p1740_p7 = scmp.lt.u32.totalorder %s2251_s9, %s2307_s6 }
 0x910   : > { %p1741_p11 = scmp.lt.u32.totalorder %s1739_s16, %s1735_s18  ;;  %p1743_p0 = scmp.lt.u32.totalorder %s1735_s18, %s2251_s9 }
 0x911   : > { %p1737_p12 = pnand %p1736_p6, %p2336_p2 }
 0x912   : > { %p1742_p9 = por %p1741_p11, %p1740_p7 }
 0x913   : > { %p1738_p10 = pneg %p1737_p12 }
 0x914   : > { %p1744_p4 = por %p1743_p0, %p1742_p9 }
 0x916   : > { %p1745_p8 = pnand %p1744_p4, %p1738_p10 }
 0x918   : > { %1748 = shalt.err (!%p1745_p8)
}
 0x919   : > { %1464 = dma.vmem_to_hbm [thread:$0]  (%p2336_p2), %s2253_s3, 128, %s2251_s9, %s1144_s24  }
 0x91a PF: > { %s2337_s4 = sld [smem:[#allocation17_spill]]  ;;  %s2338_s14 = sld [smem:[#allocation18_spill]] }
 0x91b   : > { %p2340_p13 = scmp.ge.s32.totalorder %s1815_s26, 2 }
 0x920   : > { %s1170_s28 = sand.u32 1, %s2337_s4   ;;  %p2339_p1 = scmp.ne.s32.totalorder %s2338_s14, 0 }
 0x921   : > { %s1171_s11 = scalar_lea.sflag [#allocation4], %s1170_s28 }
 0x922   : > { %p1484_p3 = pnand %p2340_p13, %p2339_p1 }
 0x924   : > { %1790 = dma.done.wait (!%p1484_p3), %s1171_s11, 128  }
 0x925   : > { %1792 = vsyncadd (!%p1484_p3), %s1171_s11, 4294967168  ;;  %s26_s26 = sadd.s32 1, %s1815_s26   ;;  %s2341_s21 = smov %s1799_s22 }
 0x926   : > { %p23_p5 = scmp.ge.s32.totalorder %s26_s26, 4   ;;  %s2342_s22 = smov %s1803_s23 }
 0x927   : > { %s2343_s23 = smov %s2039_s15  ;;  %s2344_s24 = smov %s1811_s25 }
 0x928   : > { %s2345_s25 = smov %s2347_s10  ;;  %25 = sbr.rel (!%p23_p5) target bundleno = 13 (0xd), region = 114 }
 0x92f   :  { %1176 = vsyncpa [#allocation3], 1 }
 0x930   :  { %1178 = vsyncpa [#allocation3 + $0x1], 1 }
 0x931   :  { %1179 = vsyncpa [#allocation6], 1 }
 0x932   :  { %1181 = vsyncpa [#allocation6 + $0x1], 1 }
 0x933   :  { %1182 = vsyncpa [#allocation9], 1 }
 0x934   :  { %1183 = vsyncpa [#allocation4], 1 }
 0x935   :  { %1185 = vsyncpa [#allocation4 + $0x1], 1 }

</bundles_post_ra>
